<compile_context>
chip_gen: v7x
topology: tpu7x:2x2x1
jax: 0.10.0
libtpu: 0.0.40
codegen_flags: <defaults>
</compile_context>

<pallas_src>
import functools
import math

import jax
import jax.numpy as jnp
import numpy as np
from jax import lax
from jax.experimental import pallas as pl
from jax.experimental.pallas import tpu as pltpu

EPS = 1e-3


def _round_up(x, n):
    return ((x + n - 1) // n) * n


_MM = (((1,), (0,)), ((), ()))      # a @ b
_MM_T = (((1,), (1,)), ((), ()))    # a @ b.T


def _dot3x(a, b, dims):
    """f32-accurate matmul as 3 native bf16 MXU passes (f32 accumulate).

    Splits each f32 operand into bf16 hi + bf16 lo and drops only the lo*lo
    term (~2^-18 relative error on unit-norm dot products) -- far cheaper than
    Precision.HIGHEST while comfortably inside the head's tolerance budget.
    """
    a_hi = a.astype(jnp.bfloat16)
    a_lo = (a - a_hi.astype(jnp.float32)).astype(jnp.bfloat16)
    b_hi = b.astype(jnp.bfloat16)
    b_lo = (b - b_hi.astype(jnp.float32)).astype(jnp.bfloat16)
    dg = functools.partial(lax.dot_general, dimension_numbers=dims,
                           preferred_element_type=jnp.float32)
    return dg(a_hi, b_hi) + dg(a_hi, b_lo) + dg(a_lo, b_hi)


# ---------------------------------------------------------------------------
# Kernel 1: ArcFace logits + running max-cosine
#   grid = (batch tiles ["parallel"], class tiles ["arbitrary"])
# ---------------------------------------------------------------------------
def _arcface_kernel(label_ref, emb_ref, ker_ref, cosm_ref, maxcos_ref,
                    *, m, s, eps, tn, num_classes, mask_classes):
    j = pl.program_id(1)                                          # class tile

    k = ker_ref[...]                                              # (E, tn) f32
    # rsqrt on the EUP slot; eps guard against degenerate (e.g. padded) columns.
    inv_norm = lax.rsqrt(jnp.maximum(jnp.sum(k * k, axis=0, keepdims=True),
                                     jnp.float32(1e-30)))         # (1, tn)

    raw = _dot3x(emb_ref[...], k, _MM)                            # (tb, tn) f32
    cos = jnp.clip(raw * inv_norm, -1.0 + eps, 1.0 - eps)

    col_ids = j * tn + lax.broadcasted_iota(jnp.int32, cos.shape, 1)
    is_tgt = col_ids == label_ref[...]                            # (tb, tn) bool

    # cos(clip(theta + m, eps, pi - eps)) for the target column, without acos.
    # Non-target columns are unchanged (cos is pre-clipped, so theta already
    # lies inside [eps, pi - eps]); a single final select suffices.
    sin_theta = jnp.sqrt(1.0 - cos * cos)
    tgt = cos * jnp.float32(math.cos(m)) - sin_theta * jnp.float32(math.sin(m))
    #   theta + m > pi - eps   <=>   cos < cos(pi - eps - m)
    tgt = jnp.where(cos < jnp.float32(math.cos(math.pi - eps - m)),
                    jnp.float32(math.cos(math.pi - eps)), tgt)
    if eps > m:  # lower clip only reachable when eps > m; statically dead otherwise
        tgt = jnp.where(cos > jnp.float32(math.cos(eps - m)),
                        jnp.float32(math.cos(eps)), tgt)
    cos_theta_m = jnp.where(is_tgt, tgt, cos)

    # Keep logits f32: the s=64 scale amplifies bf16 rounding past tolerance.
    cosm_ref[...] = cos_theta_m * s

    if mask_classes:  # padded class columns must not affect max_cos
        cos_for_max = jnp.where(col_ids < num_classes, cos, jnp.float32(-jnp.inf))
    else:
        cos_for_max = cos

    @pl.when(j == 0)
    def _():
        maxcos_ref[...] = jnp.full(maxcos_ref.shape, -jnp.inf, jnp.float32)

    maxcos_ref[...] = jnp.maximum(maxcos_ref[...],
                                  jnp.max(cos_for_max, axis=1, keepdims=True))


def arcface_logits(embeddings, kernel_w, label, *, m, s, eps, tn=512, tb=128):
    B, E = embeddings.shape
    E2, C = kernel_w.shape
    assert E2 == E

    tn = min(tn, _round_up(C, 128))          # lane-dense class tile
    C_p = _round_up(C, tn)
    tb = min(tb, _round_up(B, 8))            # bounds vreg pressure; megacore axis
    B_p = _round_up(B, tb)

    emb = embeddings if B_p == B else jnp.pad(embeddings, ((0, B_p - B), (0, 0)))
    ker = kernel_w if C_p == C else jnp.pad(kernel_w, ((0, 0), (0, C_p - C)))
    lab = label.astype(jnp.int32)
    lab = lab if B_p == B else jnp.pad(lab, ((0, B_p - B),))
    label2d = lab.reshape(B_p, 1)

    kern = functools.partial(_arcface_kernel, m=float(m), s=float(s), eps=float(eps),
                             tn=tn, num_classes=C, mask_classes=(C_p != C))

    # double-buffered weight + logits tiles + resident embeddings/labels/maxcos;
    # clamp below v7x's 64 MiB physical VMEM.
    tile_bytes = 4 * (2 * E * tn + 2 * tb * tn + 2 * tb * E + 8 * tb)
    vmem_limit = int(min(max(2 * tile_bytes + (8 << 20), 32 << 20), 40 << 20))

    scaled, max_cos = pl.pallas_call(
        kern,
        out_shape=(jax.ShapeDtypeStruct((B_p, C_p), jnp.float32),
                   jax.ShapeDtypeStruct((B_p, 1), jnp.float32)),
        grid_spec=pltpu.PrefetchScalarGridSpec(
            num_scalar_prefetch=0,
            grid=(B_p // tb, C_p // tn),
            in_specs=[pl.BlockSpec((tb, 1), lambda i, j: (i, 0)),    # labels
                      pl.BlockSpec((tb, E), lambda i, j: (i, 0)),    # embeddings
                      pl.BlockSpec((E, tn), lambda i, j: (0, j))],   # weight tile
            out_specs=[pl.BlockSpec((tb, tn), lambda i, j: (i, j)),  # scaled logits
                       pl.BlockSpec((tb, 1), lambda i, j: (i, 0))],  # max-cos acc
        ),
        compiler_params=pltpu.CompilerParams(
            dimension_semantics=("parallel", "arbitrary"),
            vmem_limit_bytes=vmem_limit),
    )(label2d, emb, ker)

    if B_p != B or C_p != C:
        scaled = scaled[:B, :C]
        max_cos = max_cos[:B]
    return scaled, max_cos


# ---------------------------------------------------------------------------
# Kernel 2: OOD projection total (cond-masked, tiled over memory rows)
# ---------------------------------------------------------------------------
def _ood_total_kernel(emb_ref, mem_ref, cond_ref, tot_ref, *, eps):
    @pl.when(pl.program_id(0) == 0)
    def _():
        tot_ref[...] = jnp.zeros_like(tot_ref)

    mem = mem_ref[...]                                            # (tmr, E)
    # gram in (memory rows, batch) orientation: row weights broadcast on sublanes,
    # so the reduction is a VALU multiply + reduce (no N=1 MXU matvec).
    gram_t = jnp.clip(_dot3x(mem, emb_ref[...], _MM_T), -1.0 + eps, 1.0 - eps)
    w = jnp.sum(jnp.abs(mem), axis=1, keepdims=True) * cond_ref[...]   # (tmr, 1)
    partial = jnp.sum(jnp.sum(jnp.abs(gram_t) * w, axis=1, keepdims=True),
                      axis=0, keepdims=True)                      # (1, 1)
    tot_ref[...] += partial


def ood_total(embeddings, cond_f, *, eps, tmr=128):
    """sum_{n, m selected} |clip(<e_n, e_m>)| * ||e_m||_1.  For the initial
    (empty) queue the OOD memory == the cond-selected batch rows; the mean /
    empty-queue guard is done in JAX."""
    B, E = embeddings.shape
    tmr = min(tmr, _round_up(B, 8))
    B_p = _round_up(B, tmr)
    emb = embeddings if B_p == B else jnp.pad(embeddings, ((0, B_p - B), (0, 0)))
    cnd = cond_f if B_p == B else jnp.pad(cond_f, ((0, B_p - B), (0, 0)))

    total = pl.pallas_call(
        functools.partial(_ood_total_kernel, eps=float(eps)),
        out_shape=jax.ShapeDtypeStruct((1, 1), jnp.float32),
        grid_spec=pltpu.PrefetchScalarGridSpec(
            num_scalar_prefetch=0,
            grid=(B_p // tmr,),
            in_specs=[pl.BlockSpec((B_p, E), lambda t: (0, 0)),   # batch (resident)
                      pl.BlockSpec((tmr, E), lambda t: (t, 0)),   # memory tile
                      pl.BlockSpec((tmr, 1), lambda t: (t, 0))],  # cond tile
            out_specs=pl.BlockSpec((1, 1), lambda t: (0, 0)),
        ),
        compiler_params=pltpu.CompilerParams(
            dimension_semantics=("arbitrary",)),
    )(emb, emb, cnd)
    return total[0, 0]


# ---------------------------------------------------------------------------
# Forward (glue in plain JAX; hot paths in the two kernels above)
# ---------------------------------------------------------------------------
def arcwface_forward(embeddings, norms, label, kernel_w,
                     s=64.0, m=0.5, t_alpha=1.0, h=0.333, eps=EPS,
                     batch_mean0=10.0, batch_std0=10.0):
    scaled_cosine_m, max_cos = arcface_logits(embeddings, kernel_w, label,
                                              m=m, s=s, eps=eps)

    safe_norms = jnp.clip(norms, 0.001, 100.0)                   # (B, 1)
    mean = jnp.mean(safe_norms)
    std = jnp.std(safe_norms, ddof=1)                            # torch.std is unbiased
    batch_mean = mean * t_alpha + (1.0 - t_alpha) * batch_mean0
    batch_std = std * t_alpha + (1.0 - t_alpha) * batch_std0
    margin_scaler = jnp.clip((safe_norms - batch_mean) / (batch_std + eps) * h,
                             -1.0, 1.0)                          # (B, 1)

    cond = (max_cos < 0.5) & (margin_scaler > 0.2)               # (B, 1) bool
    condf = cond.astype(jnp.float32)
    nsel = jnp.sum(condf)

    # OOD memory == embeddings[cond] for the initial (empty) queue.
    total = ood_total(embeddings, condf, eps=eps)
    B = embeddings.shape[0]
    loss = jnp.where(nsel > 0.0, total / (B * jnp.maximum(nsel, 1.0)), 0.0)

    return scaled_cosine_m, cond, loss, margin_scaler


# ---------------------------------------------------------------------------
# Pure-JAX reference (mirrors the PyTorch forward) for validation
# ---------------------------------------------------------------------------
def reference_forward(embeddings, norms, label, kernel_w,
                      s=64.0, m=0.5, t_alpha=1.0, h=0.333, eps=EPS,
                      batch_mean0=10.0, batch_std0=10.0):
    hi = jax.lax.Precision.HIGHEST
    kn = kernel_w / jnp.linalg.norm(kernel_w, axis=0, keepdims=True)
    cosine = jnp.clip(jnp.dot(embeddings, kn, precision=hi), -1.0 + eps, 1.0 - eps)

    safe_norms = jnp.clip(norms, 0.001, 100.0)
    mean = jnp.mean(safe_norms)
    std = jnp.std(safe_norms, ddof=1)
    batch_mean = mean * t_alpha + (1.0 - t_alpha) * batch_mean0
    batch_std = std * t_alpha + (1.0 - t_alpha) * batch_std0
    margin_scaler = jnp.clip((safe_norms - batch_mean) / (batch_std + eps) * h, -1.0, 1.0)

    max_cos = jnp.max(cosine, axis=1, keepdims=True)
    cond = (max_cos < 0.5) & (margin_scaler > 0.2)
    condf = cond.astype(jnp.float32)[:, 0]
    nsel = jnp.sum(condf)

    gram = jnp.clip(jnp.dot(embeddings, embeddings.T, precision=hi), -1.0 + eps, 1.0 - eps)
    abs_sum = jnp.sum(jnp.abs(embeddings), axis=1)
    total = jnp.sum(jnp.abs(gram) * (abs_sum * condf)[None, :])
    B = embeddings.shape[0]
    loss = jnp.where(nsel > 0, total / (B * jnp.maximum(nsel, 1.0)), 0.0)

    m_hot = jnp.zeros((B, cosine.shape[1]), jnp.float32).at[jnp.arange(B), label].set(m)
    theta = jnp.arccos(cosine)
    theta_m = jnp.clip(theta + m_hot, eps, math.pi - eps)
    scaled = jnp.cos(theta_m) * s
    return scaled, cond, loss, margin_scaler


# ---------------------------------------------------------------------------
if __name__ == "__main__":
    # small shapes, chosen to exercise batch/class padding and >1 class tile
    B, E, C = 12, 32, 1000        # batch, embedding_size, classnum
    key = jax.random.PRNGKey(0)
    k1, k2, k3 = jax.random.split(key, 3)

    raw = jax.random.normal(k1, (B, E), jnp.float32)
    norms = jnp.linalg.norm(raw, axis=1, keepdims=True)          # (B, 1)
    embeddings = raw / norms                                     # unit-norm embeddings

    # kernel init: uniform(-1,1) then per-column renorm (mimics .renorm_(2,1,1e-5).mul_(1e5))
    W = jax.random.uniform(k2, (E, C), jnp.float32, -1.0, 1.0)
    W = W / jnp.linalg.norm(W, axis=0, keepdims=True)

    label = jax.random.randint(k3, (B,), 0, C, dtype=jnp.int32)

    fwd = jax.jit(arcwface_forward)
    scaled, cond, loss, mscaler = jax.block_until_ready(fwd(embeddings, norms, label, W))

    ref_scaled, ref_cond, ref_loss, ref_ms = reference_forward(embeddings, norms, label, W)

    assert scaled.shape == (B, C) and cond.shape == (B, 1)
    assert np.allclose(np.asarray(scaled), np.asarray(ref_scaled), atol=2e-2, rtol=1e-3), \
        "scaled_cosine_m mismatch"
    assert np.array_equal(np.asarray(cond), np.asarray(ref_cond)), "cond mismatch"
    assert np.allclose(float(loss), float(ref_loss), atol=1e-3, rtol=1e-3), "OOD loss mismatch"
    assert np.allclose(np.asarray(mscaler), np.asarray(ref_ms), atol=1e-5), "margin_scaler mismatch"

    print("KERNEL_OK")
</pallas_src>

<mosaic_0001>
module attributes {stable_mosaic.version = 11 : i64} {
  func.func @_ood_total_kernel(%arg0: i32, %arg1: memref<16x32xf32, #tpu.memory_space<vmem>>, %arg2: memref<16x32xf32, #tpu.memory_space<vmem>>, %arg3: memref<16x1xf32, #tpu.memory_space<vmem>>, %arg4: memref<1x1xf32, #tpu.memory_space<vmem>>) attributes {dimension_semantics = [#tpu.dimension_semantics<arbitrary>], iteration_bounds = array<i64: 1>, scalar_prefetch = 0 : i64, scratch_operands = 0 : i64, tpu.core_type = #tpu.core_type<tc>, window_params = [{pipeline_mode = #tpu.pipeline_mode<synchronous>, transform_indices = @transform_0, window_bounds = array<i64: 16, 32>}, {transform_indices = @transform_1, window_bounds = array<i64: 16, 32>}, {transform_indices = @transform_2, window_bounds = array<i64: 16, 1>}, {pipeline_mode = #tpu.pipeline_mode<synchronous>, transform_indices = @transform_3, window_bounds = array<i64: 1, 1>}]} {
    %c0_i32 = arith.constant 0 : i32
    %0 = arith.cmpi eq, %arg0, %c0_i32 : i32
    %1 = arith.extui %0 : i1 to i32
    %c0_i32_0 = arith.constant 0 : i32
    %2 = arith.cmpi ne, %1, %c0_i32_0 : i32
    scf.if %2 {
      %cst_17 = arith.constant 0.000000e+00 : f32
      %37 = vector.broadcast %cst_17 : f32 to vector<1x1xf32>
      %c0_18 = arith.constant 0 : index
      %c0_19 = arith.constant 0 : index
      %38 = vector.load %arg4[%c0_18, %c0_19] : memref<1x1xf32, #tpu.memory_space<vmem>>, vector<1x1xf32>
      tpu.vector_store %arg4[%c0_18, %c0_19], %37 {strides = array<i32>} : memref<1x1xf32, #tpu.memory_space<vmem>>, vector<1x1xf32>,
    } else {
    }
    %c0 = arith.constant 0 : index
    %c0_1 = arith.constant 0 : index
    %3 = vector.load %arg2[%c0, %c0_1] : memref<16x32xf32, #tpu.memory_space<vmem>>, vector<16x32xf32>
    %c0_2 = arith.constant 0 : index
    %c0_3 = arith.constant 0 : index
    %4 = vector.load %arg1[%c0_2, %c0_3] : memref<16x32xf32, #tpu.memory_space<vmem>>, vector<16x32xf32>
    %5 = arith.truncf %3 : vector<16x32xf32> to vector<16x32xbf16>
    %6 = arith.extf %5 : vector<16x32xbf16> to vector<16x32xf32>
    %7 = arith.subf %3, %6 : vector<16x32xf32>
    %8 = arith.truncf %7 : vector<16x32xf32> to vector<16x32xbf16>
    %9 = arith.truncf %4 : vector<16x32xf32> to vector<16x32xbf16>
    %10 = arith.extf %9 : vector<16x32xbf16> to vector<16x32xf32>
    %11 = arith.subf %4, %10 : vector<16x32xf32>
    %12 = arith.truncf %11 : vector<16x32xf32> to vector<16x32xbf16>
    %cst = arith.constant dense<0.000000e+00> : vector<16x16xf32>
    %13 = tpu.matmul %5, %9, %cst {dimension_numbers = #tpu.dot_dimension_numbers<[1], [1], [0], [0], [0, 0, 1, 0], [], []>} : vector<16x32xbf16>, vector<16x32xbf16>, vector<16x16xf32> -> vector<16x16xf32>
    %cst_4 = arith.constant dense<0.000000e+00> : vector<16x16xf32>
    %14 = tpu.matmul %5, %12, %cst_4 {dimension_numbers = #tpu.dot_dimension_numbers<[1], [1], [0], [0], [0, 0, 1, 0], [], []>} : vector<16x32xbf16>, vector<16x32xbf16>, vector<16x16xf32> -> vector<16x16xf32>
    %15 = arith.addf %13, %14 : vector<16x16xf32>
    %cst_5 = arith.constant dense<0.000000e+00> : vector<16x16xf32>
    %16 = tpu.matmul %8, %9, %cst_5 {dimension_numbers = #tpu.dot_dimension_numbers<[1], [1], [0], [0], [0, 0, 1, 0], [], []>} : vector<16x32xbf16>, vector<16x32xbf16>, vector<16x16xf32> -> vector<16x16xf32>
    %17 = arith.addf %15, %16 : vector<16x16xf32>
    %cst_6 = arith.constant -9.990000e-01 : f32
    %cst_7 = arith.constant 9.990000e-01 : f32
    %18 = vector.broadcast %cst_6 : f32 to vector<16x16xf32>
    %19 = arith.maximumf %18, %17 : vector<16x16xf32>
    %20 = vector.broadcast %cst_7 : f32 to vector<16x16xf32>
    %21 = arith.minimumf %20, %19 : vector<16x16xf32>
    %22 = math.absf %3 : vector<16x32xf32>
    %cst_8 = arith.constant dense<0.000000e+00> : vector<16xf32>
    %23 = vector.multi_reduction <add>, %22, %cst_8 [1] : vector<16x32xf32> to vector<16xf32>
    %24 = vector.shape_cast %23 : vector<16xf32> to vector<16x1xf32>
    %c0_9 = arith.constant 0 : index
    %c0_10 = arith.constant 0 : index
    %25 = vector.load %arg3[%c0_9, %c0_10] : memref<16x1xf32, #tpu.memory_space<vmem>>, vector<16x1xf32>
    %26 = arith.mulf %24, %25 : vector<16x1xf32>
    %27 = math.absf %21 : vector<16x16xf32>
    %28 = vector.broadcast %26 : vector<16x1xf32> to vector<16x16xf32>
    %29 = arith.mulf %27, %28 : vector<16x16xf32>
    %cst_11 = arith.constant dense<0.000000e+00> : vector<16xf32>
    %30 = vector.multi_reduction <add>, %29, %cst_11 [1] : vector<16x16xf32> to vector<16xf32>
    %31 = vector.shape_cast %30 : vector<16xf32> to vector<16x1xf32>
    %cst_12 = arith.constant dense<0.000000e+00> : vector<1xf32>
    %32 = vector.multi_reduction <add>, %31, %cst_12 [0] : vector<16x1xf32> to vector<1xf32>
    %33 = vector.shape_cast %32 : vector<1xf32> to vector<1x1xf32>
    %c0_13 = arith.constant 0 : index
    %c0_14 = arith.constant 0 : index
    %34 = vector.load %arg4[%c0_13, %c0_14] : memref<1x1xf32, #tpu.memory_space<vmem>>, vector<1x1xf32>
    %35 = arith.addf %34, %33 : vector<1x1xf32>
    %c0_15 = arith.constant 0 : index
    %c0_16 = arith.constant 0 : index
    %36 = vector.load %arg4[%c0_15, %c0_16] : memref<1x1xf32, #tpu.memory_space<vmem>>, vector<1x1xf32>
    tpu.vector_store %arg4[%c0_15, %c0_16], %35 {strides = array<i32>} : memref<1x1xf32, #tpu.memory_space<vmem>>, vector<1x1xf32>,
    return
  }
  func.func @transform_0(%arg0: i32) -> (i32, i32) {
    %c0_i32 = arith.constant 0 : i32
    %c0_i32_0 = arith.constant 0 : i32
    %c0_i32_1 = arith.constant 0 : i32
    return %c0_i32, %c0_i32_0 : i32, i32
  }
  func.func @transform_1(%arg0: i32) -> (i32, i32) {
    %c0_i32 = arith.constant 0 : i32
    %c0_i32_0 = arith.constant 0 : i32
    return %arg0, %c0_i32 : i32, i32
  }
  func.func @transform_2(%arg0: i32) -> (i32, i32) {
    %c0_i32 = arith.constant 0 : i32
    %c0_i32_0 = arith.constant 0 : i32
    return %arg0, %c0_i32 : i32, i32
  }
  func.func @transform_3(%arg0: i32) -> (i32, i32) {
    %c0_i32 = arith.constant 0 : i32
    %c0_i32_0 = arith.constant 0 : i32
    %c0_i32_1 = arith.constant 0 : i32
    return %c0_i32, %c0_i32_0 : i32, i32
  }
}

module attributes {stable_mosaic.version = 11 : i64} {
  func.func @_arcface_kernel(%arg0: i32, %arg1: i32, %arg2: memref<16x1xi32, #tpu.memory_space<vmem>>, %arg3: memref<16x32xf32, #tpu.memory_space<vmem>>, %arg4: memref<32x512xf32, #tpu.memory_space<vmem>>, %arg5: memref<16x512xf32, #tpu.memory_space<vmem>>, %arg6: memref<16x1xf32, #tpu.memory_space<vmem>>) attributes {dimension_semantics = [#tpu.dimension_semantics<parallel>, #tpu.dimension_semantics<arbitrary>], iteration_bounds = array<i64: 1, 2>, scalar_prefetch = 0 : i64, scratch_operands = 0 : i64, tpu.core_type = #tpu.core_type<tc>, window_params = [{transform_indices = @transform_0, window_bounds = array<i64: 16, 1>}, {transform_indices = @transform_1, window_bounds = array<i64: 16, 32>}, {transform_indices = @transform_2, window_bounds = array<i64: 32, 512>}, {transform_indices = @transform_3, window_bounds = array<i64: 16, 512>}, {transform_indices = @transform_4, window_bounds = array<i64: 16, 1>}]} {
    %c0 = arith.constant 0 : index
    %c0_0 = arith.constant 0 : index
    %0 = vector.load %arg4[%c0, %c0_0] : memref<32x512xf32, #tpu.memory_space<vmem>>, vector<32x512xf32>
    %1 = arith.mulf %0, %0 : vector<32x512xf32>
    %cst = arith.constant dense<0.000000e+00> : vector<512xf32>
    %2 = vector.multi_reduction <add>, %1, %cst [0] : vector<32x512xf32> to vector<512xf32>
    %3 = vector.shape_cast %2 : vector<512xf32> to vector<1x512xf32>
    %cst_1 = arith.constant 1.000000e-30 : f32
    %4 = vector.broadcast %cst_1 : f32 to vector<1x512xf32>
    %5 = arith.maximumf %3, %4 : vector<1x512xf32>
    %6 = math.rsqrt %5 : vector<1x512xf32>
    %c0_2 = arith.constant 0 : index
    %c0_3 = arith.constant 0 : index
    %7 = vector.load %arg3[%c0_2, %c0_3] : memref<16x32xf32, #tpu.memory_space<vmem>>, vector<16x32xf32>
    %8 = arith.truncf %7 : vector<16x32xf32> to vector<16x32xbf16>
    %9 = arith.extf %8 : vector<16x32xbf16> to vector<16x32xf32>
    %10 = arith.subf %7, %9 : vector<16x32xf32>
    %11 = arith.truncf %10 : vector<16x32xf32> to vector<16x32xbf16>
    %12 = arith.truncf %0 : vector<32x512xf32> to vector<32x512xbf16>
    %13 = arith.extf %12 : vector<32x512xbf16> to vector<32x512xf32>
    %14 = arith.subf %0, %13 : vector<32x512xf32>
    %15 = arith.truncf %14 : vector<32x512xf32> to vector<32x512xbf16>
    %cst_4 = arith.constant dense<0.000000e+00> : vector<16x512xf32>
    %16 = tpu.matmul %8, %12, %cst_4 {dimension_numbers = #tpu.dot_dimension_numbers<[1], [0], [0], [1], [0, 0, 1, 1], [], []>} : vector<16x32xbf16>, vector<32x512xbf16>, vector<16x512xf32> -> vector<16x512xf32>
    %cst_5 = arith.constant dense<0.000000e+00> : vector<16x512xf32>
    %17 = tpu.matmul %8, %15, %cst_5 {dimension_numbers = #tpu.dot_dimension_numbers<[1], [0], [0], [1], [0, 0, 1, 1], [], []>} : vector<16x32xbf16>, vector<32x512xbf16>, vector<16x512xf32> -> vector<16x512xf32>
    %18 = arith.addf %16, %17 : vector<16x512xf32>
    %cst_6 = arith.constant dense<0.000000e+00> : vector<16x512xf32>
    %19 = tpu.matmul %11, %12, %cst_6 {dimension_numbers = #tpu.dot_dimension_numbers<[1], [0], [0], [1], [0, 0, 1, 1], [], []>} : vector<16x32xbf16>, vector<32x512xbf16>, vector<16x512xf32> -> vector<16x512xf32>
    %20 = arith.addf %18, %19 : vector<16x512xf32>
    %21 = vector.broadcast %6 : vector<1x512xf32> to vector<16x512xf32>
    %22 = arith.mulf %20, %21 : vector<16x512xf32>
    %cst_7 = arith.constant -9.990000e-01 : f32
    %cst_8 = arith.constant 9.990000e-01 : f32
    %23 = vector.broadcast %cst_7 : f32 to vector<16x512xf32>
    %24 = arith.maximumf %23, %22 : vector<16x512xf32>
    %25 = vector.broadcast %cst_8 : f32 to vector<16x512xf32>
    %26 = arith.minimumf %25, %24 : vector<16x512xf32>
    %c512_i32 = arith.constant 512 : i32
    %27 = arith.muli %arg1, %c512_i32 : i32
    %28 = tpu.iota {dimensions = array<i32: 1>} : vector<16x512xi32>
    %29 = vector.broadcast %27 : i32 to vector<16x512xi32>
    %30 = arith.addi %29, %28 : vector<16x512xi32>
    %c0_9 = arith.constant 0 : index
    %c0_10 = arith.constant 0 : index
    %31 = vector.load %arg2[%c0_9, %c0_10] : memref<16x1xi32, #tpu.memory_space<vmem>>, vector<16x1xi32>
    %32 = vector.broadcast %31 : vector<16x1xi32> to vector<16x512xi32>
    %33 = arith.cmpi eq, %30, %32 : vector<16x512xi32>
    %34 = arith.mulf %26, %26 : vector<16x512xf32>
    %cst_11 = arith.constant 1.000000e+00 : f32
    %35 = vector.broadcast %cst_11 : f32 to vector<16x512xf32>
    %36 = arith.subf %35, %34 : vector<16x512xf32>
    %37 = math.sqrt %36 : vector<16x512xf32>
    %cst_12 = arith.constant 0.87758255 : f32
    %38 = vector.broadcast %cst_12 : f32 to vector<16x512xf32>
    %39 = arith.mulf %26, %38 : vector<16x512xf32>
    %cst_13 = arith.constant 0.47942555 : f32
    %40 = vector.broadcast %cst_13 : f32 to vector<16x512xf32>
    %41 = arith.mulf %37, %40 : vector<16x512xf32>
    %42 = arith.subf %39, %41 : vector<16x512xf32>
    %cst_14 = arith.constant -0.877102673 : f32
    %43 = vector.broadcast %cst_14 : f32 to vector<16x512xf32>
    %44 = arith.cmpf olt, %26, %43 : vector<16x512xf32>
    %cst_15 = arith.constant -0.999999523 : f32
    %45 = vector.broadcast %cst_15 : f32 to vector<16x512xf32>
    %46 = arith.select %44, %45, %42 : vector<16x512xi1>, vector<16x512xf32>
    %47 = arith.select %33, %46, %26 : vector<16x512xi1>, vector<16x512xf32>
    %cst_16 = arith.constant 6.400000e+01 : f32
    %48 = vector.broadcast %cst_16 : f32 to vector<16x512xf32>
    %49 = arith.mulf %47, %48 : vector<16x512xf32>
    %c0_17 = arith.constant 0 : index
    %c0_18 = arith.constant 0 : index
    %50 = vector.load %arg5[%c0_17, %c0_18] : memref<16x512xf32, #tpu.memory_space<vmem>>, vector<16x512xf32>
    tpu.vector_store %arg5[%c0_17, %c0_18], %49 {strides = array<i32>} : memref<16x512xf32, #tpu.memory_space<vmem>>, vector<16x512xf32>,
    %c1000_i32 = arith.constant 1000 : i32
    %51 = vector.broadcast %c1000_i32 : i32 to vector<16x512xi32>
    %52 = arith.cmpi slt, %30, %51 : vector<16x512xi32>
    %cst_19 = arith.constant 0xFF800000 : f32
    %53 = vector.broadcast %cst_19 : f32 to vector<16x512xf32>
    %54 = arith.select %52, %26, %53 : vector<16x512xi1>, vector<16x512xf32>
    %c0_i32 = arith.constant 0 : i32
    %55 = arith.cmpi eq, %arg1, %c0_i32 : i32
    %56 = arith.extui %55 : i1 to i32
    %c0_i32_20 = arith.constant 0 : i32
    %57 = arith.cmpi ne, %56, %c0_i32_20 : i32
    scf.if %57 {
      %cst_26 = arith.constant 0xFF800000 : f32
      %63 = vector.broadcast %cst_26 : f32 to vector<16x1xf32>
      %c0_27 = arith.constant 0 : index
      %c0_28 = arith.constant 0 : index
      %64 = vector.load %arg6[%c0_27, %c0_28] : memref<16x1xf32, #tpu.memory_space<vmem>>, vector<16x1xf32>
      tpu.vector_store %arg6[%c0_27, %c0_28], %63 {strides = array<i32>} : memref<16x1xf32, #tpu.memory_space<vmem>>, vector<16x1xf32>,
    } else {
    }
    %c0_21 = arith.constant 0 : index
    %c0_22 = arith.constant 0 : index
    %58 = vector.load %arg6[%c0_21, %c0_22] : memref<16x1xf32, #tpu.memory_space<vmem>>, vector<16x1xf32>
    %cst_23 = arith.constant dense<0xFF800000> : vector<16xf32>
    %59 = vector.multi_reduction <maximumf>, %54, %cst_23 [1] : vector<16x512xf32> to vector<16xf32>
    %60 = vector.shape_cast %59 : vector<16xf32> to vector<16x1xf32>
    %61 = arith.maximumf %58, %60 : vector<16x1xf32>
    %c0_24 = arith.constant 0 : index
    %c0_25 = arith.constant 0 : index
    %62 = vector.load %arg6[%c0_24, %c0_25] : memref<16x1xf32, #tpu.memory_space<vmem>>, vector<16x1xf32>
    tpu.vector_store %arg6[%c0_24, %c0_25], %61 {strides = array<i32>} : memref<16x1xf32, #tpu.memory_space<vmem>>, vector<16x1xf32>,
    return
  }
  func.func @transform_0(%arg0: i32, %arg1: i32) -> (i32, i32) {
    %c0_i32 = arith.constant 0 : i32
    %c0_i32_0 = arith.constant 0 : i32
    return %arg0, %c0_i32 : i32, i32
  }
  func.func @transform_1(%arg0: i32, %arg1: i32) -> (i32, i32) {
    %c0_i32 = arith.constant 0 : i32
    %c0_i32_0 = arith.constant 0 : i32
    return %arg0, %c0_i32 : i32, i32
  }
  func.func @transform_2(%arg0: i32, %arg1: i32) -> (i32, i32) {
    %c0_i32 = arith.constant 0 : i32
    %c0_i32_0 = arith.constant 0 : i32
    return %c0_i32, %arg1 : i32, i32
  }
  func.func @transform_3(%arg0: i32, %arg1: i32) -> (i32, i32) {
    %c0_i32 = arith.constant 0 : i32
    return %arg0, %arg1 : i32, i32
  }
  func.func @transform_4(%arg0: i32, %arg1: i32) -> (i32, i32) {
    %c0_i32 = arith.constant 0 : i32
    %c0_i32_0 = arith.constant 0 : i32
    return %arg0, %c0_i32 : i32, i32
  }
}

</mosaic_0001>

<bundles_post_ra>
// kernel: arcwface_forward.3
= control target key start
LH: loop header
LB: loop body
LE: loop exit
PB: predicated region body
PF: predicated region fallthrough
CT: control target
= control target key end

     0   :  { %vm38_vm0 = vcmask 261120   ;;  %v303_v5 = vmov 0.0   ;;  %vm304_vm1 = vmmov 0   ;;  %s376_s0 = inlined_call_operand.vmem [shape: f32[16,32], index: 0, kind: input, shape index: {}, may-alias: {0,1}]   ;;  %s377_s1 = inlined_call_operand.vmem [shape: f32[16,32], index: 1, kind: input, shape index: {}, may-alias: {0,1}]   ;;  %s378_s2 = inlined_call_operand.vmem [shape: f32[16,1], index: 2, kind: input, shape index: {}]   ;;  %s379_s3 = inlined_call_operand.hbm [shape: f32[1,1], index: 3, kind: output, shape index: {}]  }
   0x1   :  { %v22_v0 = vld [vmem:[%s377_s1] sm:$0xff]  ;;  %v23_v1 = vld [vmem:[%s377_s1 + $0x8] sm:$0xff]  ;;  %255 = vmatprep.subr.bf16.mxu0 %v303_v5  ;;  %257 = vmatprep.mubr.msk.bf16.mxu0 %vm304_vm1, %v303_v5 }
   0x2   :  { %v24_v2 = vld [vmem:[%s376_s0] sm:$0xff]  ;;  %v180_v3 = vand.u32 2147483647, %v22_v0  ;;  %v181_v4 = vand.u32 2147483647, %v23_v1  ;;  %v25_v6 = vld [vmem:[%s376_s0 + $0x8] sm:$0xff]  ;;  %249 = vmatprep.subr.bf16.mxu1 %v303_v5  ;;  %251 = vmatprep.mubr.msk.bf16.mxu1 %vm304_vm1, %v303_v5 }
   0x3   :  { %v32_v7 = vpack.c.bf16 %v25_v6, %v24_v2 }
   0x4   :  { %8 = vsyncpa [#allocation3], 0  ;;  %v182_v8 = vsel %vm38_vm0, %v180_v3, 0.0  ;;  %v185_v12 = vsel %vm38_vm0, %v181_v4, 0.0  ;;  %v26_v15 = vpack.c.bf16 %v23_v1, %v22_v0  ;;  %v305_v22 = vmov 0   ;;  %v188_v24 = vld [vmem:[%s378_s2] sm:$0xff] }
   0x5   :  { %183 = vadd.xlane.f32.xlu0 %v182_v8  ;;  %v87_v9 = vsel %vm38_vm0, %v32_v7, 0  ;;  %v33_v10 = vunpack.c.l.bf16 %v32_v7  ;;  %v34_v11 = vunpack.c.h.bf16 %v32_v7  ;;  %277 = vset.pattern.permute.xlu1 %v305_v22  ;;  %v189_v27 = vld [vmem:[%s378_s2 + $0x8] sm:$0xff]  ;;  %vm206_vm2 = vcmask 130048   ;;  %s306_s2 = smov [#allocation2]  }
   0x6   :  { %256 = vmatpush3.bf16.xpose.msra.mxu0 %v87_v9  ;;  %v27_v18 = vunpack.c.l.bf16 %v26_v15  ;;  %v28_v19 = vunpack.c.h.bf16 %v26_v15  ;;  %278 = vset.pattern.permute.xlu0 %v305_v22  ;;  %vm20_vm3 = vcmask 0   ;;  %s230_s22 = sshll.u32 %s306_s2, 4  ;;  %s231_s22 = int_to_ptr.vmem [resolvable:$true] %s230_s22 }
   0x7   :  { %261 = vmatprep.subr.bf16.mxu0 %v303_v5  ;;  %v35_v13 = vsub.f32 %v24_v2, %v33_v10  ;;  %v36_v14 = vsub.f32 %v25_v6, %v34_v11  ;;  %21 = vst.msk [vmem:[#allocation2] sm:$0x1] %vm20_vm3, %v303_v5  ;;  %s279_s23 = scalar_lea.vmem %s231_s22, 16  ;;  %s283_s24 = scalar_lea.vmem %s231_s22, 32 }
   0x8   :  { %v30_v20 = vsub.f32 %v23_v1, %v28_v19  ;;  %v29_v21 = vsub.f32 %v22_v0, %v27_v18  ;;  %p280_p0 = scmp.ne.s32.totalorder %s231_s22, %s279_s23  ;;  %p284_p1 = scmp.lt.s32.totalorder %s231_s22, %s231_s22 }
   0x9   :  { %186 = vadd.xlane.f32.xlu0 %v185_v12  ;;  %v37_v16 = vpack.c.bf16 %v36_v14, %v35_v13  ;;  %p285_p2 = scmp.lt.s32.totalorder %s283_s24, %s279_s23 }
   0xa   :  { %v31_v23 = vpack.c.bf16 %v30_v20, %v29_v21 }
   0xb   :  { %v43_v17 = vsel %vm38_vm0, %v37_v16, 0  ;;  %p286_p3 = por %p285_p2, %p284_p1 }
   0xc   :  { %250 = vmatpush3.bf16.xpose.msra.mxu1 %v43_v17 }
   0xd   :  { %258 = vmatmul.mubr.msk.bf16.vlgmr.msra.gmra.mrb[0].mxu0 %vm38_vm0, %v26_v15  ;;  %p287_p4 = pnand %p286_p3, %p280_p0 }
   0xe   :  { %262 = vmatpush3.bf16.xpose.msra.mxu0 %v87_v9  ;;  %263 = vmatprep.mubr.msk.bf16.mxu0 %vm304_vm1, %v303_v5  ;;  %v220_v58 = vld [vmem:[#allocation2] sm:$0x1] }
  0x13   :  { %252 = vmatmul.mubr.msk.bf16.vlgmr.msra.gmra.mrb[0].mxu1 %vm38_vm0, %v26_v15 }
  0x19   :  { %264 = vmatmul.mubr.msk.bf16.vlgmr.msra.gmra.mrb[0].mxu0 %vm38_vm0, %v31_v23 }
  0x92   :  { %v184_v25 = vpop.xlane.xlu0 %183 }
  0x93   :  { %v190_v26 = vmul.f32 %v188_v24, %v184_v25 }
  0x95   :  { %196 = vperm.xlu1 %277, %v190_v26  }
  0x96   :  { %v187_v28 = vpop.xlane.xlu0 %186 }
  0x97   :  { %v191_v29 = vmul.f32 %v189_v27, %v187_v28 }
  0x99   :  { %201 = vperm.xlu1 %277, %v191_v29  }
  0xe6   :  { %v79_v30 = vpop.f32.mrb[0].mxu1 }
  0xe7   :  { %v253_v31 = vpop.f32.mrb[1].mxu1 }
  0xe8   :  { %v82_v32 = vpop.f32.mrb[2].mxu1 }
  0xe9   :  { %v254_v33 = vpop.f32.mrb[3].mxu1 }
  0xec   :  { %v167_v34 = vpop.f32.mrb[0].mxu0 }
  0xed   :  { %v267_v35 = vadd.f32 %v167_v34, %v79_v30  ;;  %v265_v36 = vpop.f32.mrb[1].mxu0 }
  0xee   :  { %v170_v37 = vpop.f32.mrb[2].mxu0 }
  0xef   :  { %v268_v38 = vadd.f32 %v170_v37, %v82_v32  ;;  %v266_v39 = vpop.f32.mrb[3].mxu0  ;;  %v241_v40 = vclamps-f32 %v267_v35, 0.999 }
  0xf1   :  { %v192_v41 = vand.u32 2147483647, %v241_v40  ;;  %v242_v42 = vclamps-f32 %v268_v38, 0.999 }
  0xf3   :  { %v193_v45 = vand.u32 2147483647, %v242_v42 }
 0x114   :  { %v197_v43 = vpop.permute.xlu1 %196 }
 0x115   :  { %v204_v44 = vmul.f32 %v197_v43, %v192_v41 }
 0x117   :  { %v207_v46 = vsel %vm206_vm2, %v204_v44, 0.0 }
 0x118   :  { %v202_v47 = vpop.permute.xlu1 %201  ;;  %208 = vadd.xlane.f32.xlu0 %v207_v46 }
 0x119   :  { %v205_v48 = vmul.f32 %v202_v47, %v193_v45 }
 0x11b   :  { %v210_v49 = vsel %vm206_vm2, %v205_v48, 0.0 }
 0x11c   :  { %211 = vadd.xlane.f32.xlu1 %v210_v49 }
 0x1a5   :  { %v209_v50 = vpop.xlane.xlu0 %208 }
 0x1a9   :  { %v212_v51 = vpop.xlane.xlu1 %211 }
 0x1aa   :  { %v213_v52 = vadd.f32 %v212_v51, %v209_v50 }
 0x1ac   :  { %v214_v53 = vrot.slane %v213_v52, 4 }
 0x1ae   :  { %v215_v54 = vadd.f32 %v214_v53, %v213_v52 }
 0x1b0   :  { %v216_v55 = vrot.slane %v215_v54, 2 }
 0x1b2   :  { %v217_v56 = vadd.f32 %v216_v55, %v215_v54 }
 0x1b4   :  { %v218_v57 = vrot.slane %v217_v56, 1 }
 0x1b6   :  { %v219_v59 = vadd.f32 %v218_v57, %v217_v56 }
 0x1b8   :  { %v221_v60 = vadd.f32 %v220_v58, %v219_v59 }
 0x1ba   :  { %223 = vst.msk [vmem:[#allocation2] sm:$0x1] %vm20_vm3, %v221_v60 }
 0x1bb   :  { %290 = shalt.err (!%p287_p4)
}
 0x1bc   :  { %s291_s27 = scalar_lea.hbm %s379_s3, 16 }
 0x1bd   :  { %p292_p5 = scmp.ne.s32.totalorder %s379_s3, %s291_s27  ;;  %p295_p6 = scmp.lt.u32.totalorder %s291_s27, %s379_s3 }
 0x1bf   :  { %p297_p7 = pnand %p295_p6, %p292_p5 }
 0x1c1   :  { %300 = shalt.err (!%p297_p7)
}
 0x1c2   :  { %233 = dma.vmem_to_hbm [thread:$0]  %s231_s22, 16, %s379_s3, [#allocation3]  }
 0x1c3   :  { %301 = dma.done.wait [#allocation3], 16  }
 0x1c4   :  { %302 = vsyncadd [#allocation3], 4294967280 }
 0x1c5   :  { %237 = vsyncpa [#allocation3], 1 }

// kernel: arcwface_forward.2
= control target key start
LH: loop header
LB: loop body
LE: loop exit
PB: predicated region body
PF: predicated region fallthrough
CT: control target
= control target key end

     0   :  { %10 = vsyncpa [#allocation4], 0  ;;  %s1888_s0 = inlined_call_operand.vmem [shape: s32[16,1], index: 0, kind: input, shape index: {}]   ;;  %s1889_s1 = inlined_call_operand.vmem [shape: f32[16,32], index: 1, kind: input, shape index: {}]   ;;  %s1890_s2 = inlined_call_operand.vmem [shape: f32[32,1024], index: 2, kind: input, shape index: {}]   ;;  %s1891_s3 = inlined_call_operand.hbm [shape: f32[16,1024], index: 3, kind: output, shape index: {0}]   ;;  %s1892_s4 = inlined_call_operand.vmem [shape: f32[16,1], index: 4, kind: output, shape index: {1}]  }
   0x1   :  { %12 = vsyncpa [#allocation4 + $0x1], 0  ;;  %s1356_s15 = smov 0   ;;  %s1358_s16 = smov 0  }
   0x2   :  { %s1360_s17 = smov 0   ;;  %s1362_s18 = smov 0  }
   0x3   :  { %s1364_s19 = smov 0   ;;  %s1366_s20 = smov 0  }
   0x4 LB: > { %s1107_s21 = sadd.s32 4294967295, %s1323_s20   ;;  %s1108_s22 = sadd.s32 4294967294, %s1323_s20   ;;  %s1323_s20 = sphi %s1366_s20, %s18_s20   ;;  %s1319_s19 = sphi %s1364_s19, %s1901_s19   ;;  %s1315_s18 = sphi %s1362_s18, %s1900_s18   ;;  %s1311_s17 = sphi %s1360_s17, %s1899_s17   ;;  %s1307_s16 = sphi %s1358_s16, %s1898_s16   ;;  %s1303_s15 = sphi %s1356_s15, %s1897_s15  }
   0x5   : > { %s27_s23 = sadd.s32 1, %s1319_s19  ;;  %s89_s24 = sadd.s32 1, %s1311_s17 }
   0x6   : > { %p28_p0 = scmp.ge.s32.totalorder %s27_s23, 2  ;;  %p96_p1 = scmp.ne.s32.totalorder %s1311_s17, %s1307_s16 }
   0x7   : > { %p97_p2 = scmp.eq.s32.totalorder %s1323_s20, 0  ;;  %p128_p3 = scmp.eq.s32.totalorder %s1107_s21, 1 }
   0x8   : > { %s1903_s23 = smov (%p28_p0, %s27_s23), 0  ;;  %p133_p6 = scmp.ne.s32.totalorder %s1307_s16, %s1303_s15 }
   0x9   : > { %p98_p4 = por %p97_p2, %p96_p1  ;;  %p1395_p5 = por %p128_p3, %p96_p1 }
   0xa   : > { %s86_s26 = ssub.s32 %s1319_s19, %s1903_s23  ;;  %p134_p8 = scmp.eq.s32.totalorder %s1108_s22, 1 }
   0xb   : > { %p87_p7 = scmp.eq.s32.totalorder %s86_s26, 0  ;;  %p1112_p10 = scmp.ge.s32.totalorder %s1323_s20, 2 }
   0xc   : > { %p1406_p9 = por %p134_p8, %p133_p6 }
   0xd   : > { %s1404_s27 = scalar_select %p87_p7, %s1311_s17, %s89_s24  }
   0xe   : > { %194 = sbr.rel (%p1112_p10) target bundleno = 33 (0x21), region = 24 }
  0x15   : > { %197 = sbr.rel (!%p98_p4) target bundleno = 33 (0x21), region = 28  ;;  %s199_s29 = sand.u32 (%p98_p4), 1, %s1311_s17  }
  0x16   : > { %s1142_s30 = sshll.u32 (%p98_p4), %s1319_s19, 5  ;;  %s1113_s5 = sshll.u32 (%p98_p4), %s199_s29, 7 }
  0x17   : > { %s1418_s8 = scalar_lea.vmem (%p98_p4), %s1890_s2, %s1142_s30  ;;  %s201_s9 = scalar_lea.vmem (%p98_p4), [#allocation2], %s1113_s5 }
  0x18   : > { %v217_v0 = vld [vmem:[%s1418_s8] sm:$0xff] (%p98_p4)  ;;  %v219_v1 = vld [vmem:[%s1418_s8 + $0x8] sm:$0xff] (%p98_p4)  ;;  %v221_v2 = vld [vmem:[%s1418_s8 + $0x10] sm:$0xff] (%p98_p4) }
  0x19   : > { %218 = vst [vmem:[%s201_s9] sm:$0xff] (%p98_p4), %v217_v0  ;;  %220 = vst [vmem:[%s201_s9 + $0x8] sm:$0xff] (%p98_p4), %v219_v1  ;;  %v223_v3 = vld [vmem:[%s1418_s8 + $0x18] sm:$0xff] (%p98_p4)  ;;  %v225_v4 = vld [vmem:[%s1418_s8 + $0x40] sm:$0xff] (%p98_p4) }
  0x1a   : > { %222 = vst [vmem:[%s201_s9 + $0x10] sm:$0xff] (%p98_p4), %v221_v2  ;;  %v227_v5 = vld [vmem:[%s1418_s8 + $0x48] sm:$0xff] (%p98_p4)  ;;  %224 = vst [vmem:[%s201_s9 + $0x18] sm:$0xff] (%p98_p4), %v223_v3  ;;  %v229_v6 = vld [vmem:[%s1418_s8 + $0x50] sm:$0xff] (%p98_p4) }
  0x1b   : > { %226 = vst [vmem:[%s201_s9 + $0x20] sm:$0xff] (%p98_p4), %v225_v4  ;;  %228 = vst [vmem:[%s201_s9 + $0x28] sm:$0xff] (%p98_p4), %v227_v5  ;;  %v231_v7 = vld [vmem:[%s1418_s8 + $0x58] sm:$0xff] (%p98_p4)  ;;  %v233_v8 = vld [vmem:[%s1418_s8 + $0x80] sm:$0xff] (%p98_p4) }
  0x1c   : > { %230 = vst [vmem:[%s201_s9 + $0x30] sm:$0xff] %v229_v6  ;;  %232 = vst [vmem:[%s201_s9 + $0x38] sm:$0xff] %v231_v7  ;;  %v235_v9 = vld [vmem:[%s1418_s8 + $0x88] sm:$0xff]  ;;  %v237_v10 = vld [vmem:[%s1418_s8 + $0x90] sm:$0xff] }
  0x1d   : > { %234 = vst [vmem:[%s201_s9 + $0x40] sm:$0xff] %v233_v8  ;;  %v239_v11 = vld [vmem:[%s1418_s8 + $0x98] sm:$0xff]  ;;  %236 = vst [vmem:[%s201_s9 + $0x48] sm:$0xff] %v235_v9  ;;  %v241_v12 = vld [vmem:[%s1418_s8 + $0xc0] sm:$0xff] }
  0x1e   : > { %238 = vst [vmem:[%s201_s9 + $0x50] sm:$0xff] %v237_v10  ;;  %240 = vst [vmem:[%s201_s9 + $0x58] sm:$0xff] %v239_v11  ;;  %v243_v13 = vld [vmem:[%s1418_s8 + $0xc8] sm:$0xff]  ;;  %v245_v14 = vld [vmem:[%s1418_s8 + $0xd0] sm:$0xff] }
  0x1f   : > { %242 = vst [vmem:[%s201_s9 + $0x60] sm:$0xff] %v241_v12  ;;  %244 = vst [vmem:[%s201_s9 + $0x68] sm:$0xff] %v243_v13  ;;  %v247_v15 = vld [vmem:[%s1418_s8 + $0xd8] sm:$0xff] }
  0x20   : > { %246 = vst [vmem:[%s201_s9 + $0x70] sm:$0xff] %v245_v14  ;;  %248 = vst [vmem:[%s201_s9 + $0x78] sm:$0xff] %v247_v15 }
  0x21 PF: > { %p1116_p11 = scmp.ge.s32.totalorder %s1323_s20, 1  ;;  %p253_p12 = scmp.lt.s32.totalorder %s1323_s20, 3 }
  0x23   : > { %p254_p13 = pnand %p1116_p11, %p253_p12 }
  0x24   : > { %s1439_s10 = sand.u32 (!%p254_p13), 1, %s1307_s16   ;;  %v762_v16 = vld [vmem:[%s1888_s0] sm:$0xff] (!%p254_p13)  ;;  %v1325_v17 = vmov (!%p254_p13), 0   ;;  %v763_v18 = vld [vmem:[%s1888_s0 + $0x8] sm:$0xff] (!%p254_p13)  ;;  %vm454_vm0 = vcmask (!%p254_p13), 261120   ;;  %s1133_s5 = sshll.u32 (!%p254_p13), %s1315_s18, 9 }
  0x25   : > { %257 = sbr.rel (%p254_p13) target bundleno = 500 (0x1f4), region = 51  ;;  %s1117_s13 = sshll.u32 (!%p254_p13), %s1439_s10, 7  ;;  %490 = vmatprep.mubr.bf16.mxu0 (!%p254_p13), %v1325_v17  ;;  %533 = vmatprep.mubr.bf16.mxu1 (!%p254_p13), %v1325_v17 }
  0x26   : > { %1220 = vset.pattern.permute.xlu0 (!%p254_p13), %v1325_v17  ;;  %s1451_s22 = scalar_lea.vmem (!%p254_p13), [#allocation2], %s1117_s13  ;;  %s1118_s6 = sshll.u32 (!%p254_p13), %s1439_s10, 6 }
  0x27   : > { %v323_v19 = vld [vmem:[%s1451_s22 + $0x8] sm:$0xff] (!%p254_p13)  ;;  %v325_v21 = vld [vmem:[%s1451_s22 + $0x18] sm:$0xff] (!%p254_p13)  ;;  %765 = vperm.xlu0 (!%p254_p13), %1220, %v762_v16   ;;  %v322_v27 = vld [vmem:[%s1451_s22] sm:$0xff] (!%p254_p13)  ;;  %s1752_s7 = scalar_lea.vmem (!%p254_p13), [#allocation3], %s1118_s6  ;;  %p1134_p0 = scmp.ne.s32.totalorder (!%p254_p13), %s1315_s18, 0 }
  0x28   : > { %v327_v20 = vld [vmem:[%s1451_s22 + $0x28] sm:$0xff] (!%p254_p13)  ;;  %v339_v22 = vmul.f32 (!%p254_p13), %v323_v19, %v323_v19  ;;  %v329_v25 = vld [vmem:[%s1451_s22 + $0x38] sm:$0xff] (!%p254_p13)  ;;  %v341_v26 = vmul.f32 (!%p254_p13), %v325_v21, %v325_v21  ;;  %v326_v28 = vld [vmem:[%s1451_s22 + $0x20] sm:$0xff] (!%p254_p13)  ;;  %v338_v31 = vmul.f32 (!%p254_p13), %v322_v27, %v322_v27 }
  0x29   : > { %v343_v23 = vmul.f32 (!%p254_p13), %v327_v20, %v327_v20  ;;  %v1456_v24 = vpack.c.bf16 (!%p254_p13), %v327_v20, %v323_v19  ;;  %v345_v29 = vmul.f32 (!%p254_p13), %v329_v25, %v329_v25  ;;  %v1461_v30 = vpack.c.bf16 (!%p254_p13), %v329_v25, %v325_v21  ;;  %v324_v41 = vld [vmem:[%s1451_s22 + $0x10] sm:$0xff] (!%p254_p13)  ;;  %v331_v51 = vld [vmem:[%s1451_s22 + $0x48] sm:$0xff] (!%p254_p13)  ;;  %v333_v57 = vld [vmem:[%s1451_s22 + $0x58] sm:$0xff] (!%p254_p13) }
  0x2a   : > { %v342_v32 = vmul.f32 (!%p254_p13), %v326_v28, %v326_v28  ;;  %v1465_v36 = vpack.c.bf16 (!%p254_p13), %v326_v28, %v322_v27  ;;  %v328_v42 = vld [vmem:[%s1451_s22 + $0x30] sm:$0xff] (!%p254_p13)  ;;  %v340_v49 = vmul.f32 (!%p254_p13), %v324_v41, %v324_v41  ;;  %v335_v52 = vld [vmem:[%s1451_s22 + $0x68] sm:$0xff] (!%p254_p13)  ;;  %v337_v58 = vld [vmem:[%s1451_s22 + $0x78] sm:$0xff] (!%p254_p13)  ;;  %v347_v61 = vmul.f32 (!%p254_p13), %v331_v51, %v331_v51 }
  0x2b   : > { %v363_v33 = vadd.f32 (!%p254_p13), %v343_v23, %v339_v22  ;;  %v415_v34 = vunpack.c.l.bf16 (!%p254_p13), %v1456_v24  ;;  %v419_v35 = vunpack.c.h.bf16 (!%p254_p13), %v1456_v24  ;;  %v381_v37 = vadd.f32 (!%p254_p13), %v345_v29, %v341_v26  ;;  %768 = vperm.xlu0 (!%p254_p13), %1220, %v763_v18   ;;  %v330_v15 = vld [vmem:[%s1451_s22 + $0x40] sm:$0xff] (!%p254_p13) }
  0x2c   : > { %v417_v38 = vunpack.c.l.bf16 %v1461_v30  ;;  %v421_v39 = vunpack.c.h.bf16 %v1461_v30  ;;  %v354_v40 = vadd.f32 %v342_v32, %v338_v31  ;;  %v414_v45 = vunpack.c.l.bf16 %v1465_v36  ;;  %v334_v16 = vld [vmem:[%s1451_s22 + $0x60] sm:$0xff]  ;;  %v332_v31 = vld [vmem:[%s1451_s22 + $0x50] sm:$0xff] }
  0x2d   : > { %v431_v43 = vsub.f32 %v323_v19, %v415_v34  ;;  %v435_v44 = vsub.f32 %v327_v20, %v419_v35  ;;  %v418_v46 = vunpack.c.h.bf16 %v1465_v36  ;;  %v344_v50 = vmul.f32 %v328_v42, %v328_v42  ;;  %v336_v32 = vld [vmem:[%s1451_s22 + $0x70] sm:$0xff] }
  0x2e   : > { %v433_v47 = vsub.f32 %v325_v21, %v417_v38  ;;  %v437_v48 = vsub.f32 %v329_v25, %v421_v39  ;;  %v430_v54 = vsub.f32 %v322_v27, %v414_v45  ;;  %v1475_v56 = vpack.c.bf16 %v328_v42, %v324_v41  ;;  %v398_v45 = vld [vmem:[%s1889_s1] sm:$0xff] }
  0x2f   : > { %v447_v53 = vpack.c.bf16 %v435_v44, %v431_v43  ;;  %v434_v55 = vsub.f32 %v326_v28, %v418_v46  ;;  %v372_v60 = vadd.f32 %v344_v50, %v340_v49  ;;  %v351_v62 = vmul.f32 %v335_v52, %v335_v52 }
  0x30   : > { %v449_v59 = vpack.c.bf16 %v437_v48, %v433_v47  ;;  %v416_v0 = vunpack.c.l.bf16 %v1475_v56  ;;  %v420_v1 = vunpack.c.h.bf16 %v1475_v56  ;;  %v1481_v2 = vpack.c.bf16 %v335_v52, %v331_v51 }
  0x31   : > { %458 = vmatprep.subr.bf16.mxu0 %v447_v53  ;;  %v446_v63 = vpack.c.bf16 %v434_v55, %v430_v54  ;;  %v364_v3 = vadd.f32 %v363_v33, %v347_v61  ;;  %v349_v4 = vmul.f32 %v333_v57, %v333_v57  ;;  %v353_v5 = vmul.f32 %v337_v58, %v337_v58 }
  0x32   : > { %501 = vmatprep.subr.bf16.mxu1 %v449_v59  ;;  %v1483_v6 = vpack.c.bf16 %v337_v58, %v333_v57  ;;  %v432_v7 = vsub.f32 %v324_v41, %v416_v0  ;;  %v436_v8 = vsub.f32 %v328_v42, %v420_v1  ;;  %v423_v9 = vunpack.c.l.bf16 %v1481_v2 }
  0x33   : > { %459 = vmatpush1.bf16.msra.mxu0 %v446_v63  ;;  %v427_v10 = vunpack.c.h.bf16 %v1481_v2  ;;  %v1487_v11 = vadd.f32 %v364_v3, %v351_v62  ;;  %v382_v12 = vadd.f32 %v381_v37, %v349_v4  ;;  %v346_v21 = vmul.f32 %v330_v15, %v330_v15 }
  0x34   : > { %v425_v13 = vunpack.c.l.bf16 %v1483_v6  ;;  %v429_v14 = vunpack.c.h.bf16 %v1483_v6  ;;  %v448_v18 = vpack.c.bf16 %v436_v8, %v432_v7  ;;  %v439_v19 = vsub.f32 %v331_v51, %v423_v9 }
  0x35   : > { %v443_v20 = vsub.f32 %v335_v52, %v427_v10  ;;  %v1493_v22 = vadd.f32 %v382_v12, %v353_v5  ;;  %v350_v27 = vmul.f32 %v334_v16, %v334_v16  ;;  %v355_v28 = vadd.f32 %v354_v40, %v346_v21  ;;  %v399_v40 = vld [vmem:[%s1889_s1 + $0x8] sm:$0xff] }
  0x36   : > { %v441_v23 = vsub.f32 %v333_v57, %v425_v13  ;;  %v445_v25 = vsub.f32 %v337_v58, %v429_v14  ;;  %502 = vmatpush1.bf16.msra.mxu1 %v448_v18  ;;  %v410_v29 = vpack.c.bf16 %v334_v16, %v330_v15  ;;  %v348_v34 = vmul.f32 %v332_v31, %v332_v31 }
  0x37   : > { %v451_v26 = vpack.c.bf16 %v443_v20, %v439_v19  ;;  %v356_v35 = vadd.f32 %v355_v28, %v350_v27  ;;  %v352_v39 = vmul.f32 %v336_v32, %v336_v32  ;;  %v412_v42 = vpack.c.bf16 %v336_v32, %v332_v31 }
  0x38   : > { %v453_v33 = vpack.c.bf16 %v445_v25, %v441_v23  ;;  %v422_v37 = vunpack.c.l.bf16 %v410_v29  ;;  %v426_v38 = vunpack.c.h.bf16 %v410_v29  ;;  %v373_v41 = vadd.f32 %v372_v60, %v348_v34 }
  0x39   : > { %460 = vmatprep.subr.bf16.mxu0 %v451_v26  ;;  %v424_v47 = vunpack.c.l.bf16 %v412_v42  ;;  %v428_v48 = vunpack.c.h.bf16 %v412_v42  ;;  %v400_v52 = vpack.c.bf16 %v399_v40, %v398_v45  ;;  %v366_v58 = vrot.slane %v1487_v11, 4 }
  0x3a   : > { %503 = vmatprep.subr.bf16.mxu1 %v453_v33  ;;  %v438_v43 = vsub.f32 %v330_v15, %v422_v37  ;;  %v442_v44 = vsub.f32 %v334_v16, %v426_v38  ;;  %v374_v46 = vadd.f32 %v373_v41, %v352_v39  ;;  %v384_v60 = vrot.slane %v1493_v22, 4 }
  0x3b   : > { %v440_v50 = vsub.f32 %v332_v31, %v424_v47  ;;  %v444_v51 = vsub.f32 %v336_v32, %v428_v48  ;;  %v401_v54 = vunpack.c.l.bf16 %v400_v52  ;;  %v402_v55 = vunpack.c.h.bf16 %v400_v52 }
  0x3c   : > { %v450_v49 = vpack.c.bf16 %v442_v44, %v438_v43  ;;  %v375_v59 = vrot.slane %v374_v46, 4  ;;  %v385_v62 = vadd.f32 %v384_v60, %v1493_v22  ;;  %v752_v20 = vlaneseq }
  0x3d   : > { %v452_v53 = vpack.c.bf16 %v444_v51, %v440_v50  ;;  %v404_v57 = vsub.f32 %v399_v40, %v402_v55  ;;  %v757_v31 = vstv %s1133_s5 }
  0x3e   : > { %461 = vmatpush1.bf16.msra.mxu0 %v450_v49  ;;  %v376_v61 = vadd.f32 %v375_v59, %v374_v46  ;;  %v386_v3 = vrot.slane %v385_v62, 2  ;;  %v753_v21 = vand.u32 127, %v752_v20 }
  0x3f   : > { %544 = vmatprep.subr.bf16.mxu0 %v1456_v24  ;;  %504 = vmatpush1.bf16.msra.mxu1 %v452_v53 }
  0x40   : > { %587 = vmatprep.subr.bf16.mxu1 %v1461_v30  ;;  %v377_v1 = vrot.slane %v376_v61, 2  ;;  %v387_v7 = vadd.f32 %v386_v3, %v385_v62  ;;  %v1536_v46 = vadd.s32 %v757_v31, %v753_v21 }
  0x41   : > { %1119 = vmatmul.mubr.msk.bf16.vlgmr.msra.gmra.mrb[0].mxu0 %vm454_vm0, %v400_v52 }
  0x42   : > { %545 = vmatpush1.bf16.msra.mxu0 %v1465_v36  ;;  %576 = vmatprep.mubr.bf16.mxu0 %v1325_v17  ;;  %v378_v5 = vadd.f32 %v377_v1, %v376_v61  ;;  %v388_v12 = vrot.slane %v387_v7, 1  ;;  %vm914_vm1 = vcmp.lt.s32.totalorder %v1536_v46, 1000 }
  0x43   : > { %546 = vmatprep.subr.bf16.mxu0 %v1481_v2  ;;  %1120 = vmatmul.mubr.msk.bf16.vlgmr.msra.gmra.mrb[0].mxu1 %vm454_vm0, %v400_v52 }
  0x44   : > { %588 = vmatpush1.bf16.msra.mxu1 %v1475_v56  ;;  %619 = vmatprep.mubr.bf16.mxu1 %v1325_v17  ;;  %v379_v9 = vrot.slane %v378_v5, 1  ;;  %v389_v15 = vadd.f32 %v388_v12, %v387_v7 }
  0x45   : > { %589 = vmatprep.subr.bf16.mxu1 %v1483_v6 }
  0x46   : > { %547 = vmatpush1.bf16.msra.mxu0 %v410_v29  ;;  %v380_v14 = vadd.f32 %v379_v9, %v378_v5  ;;  %v393_v19 = vmax.f32 %v389_v15, 1e-30 }
  0x47   : > { %633 = vmatprep.subr.bf16.mxu0 %v1456_v24  ;;  %v403_v24 = vsub.f32 %v398_v45, %v401_v54 }
  0x48   : > { %590 = vmatpush1.bf16.msra.mxu1 %v412_v42  ;;  %v392_v18 = vmax.f32 %v380_v14, 1e-30 }
  0x49   : > { %676 = vmatprep.subr.bf16.mxu1 %v1461_v30  ;;  %v405_v30 = vpack.c.bf16 %v404_v57, %v403_v24 }
  0x4d   : > { %1121 = vmatmul.mubr.msk.bf16.vlgmr.msra.gmra.mrb[0].mxu0 %vm454_vm0, %v400_v52 }
  0x4e   : > { %634 = vmatpush1.bf16.msra.mxu0 %v1465_v36  ;;  %665 = vmatprep.mubr.bf16.mxu0 %v1325_v17  ;;  %v357_v36 = vrot.slane %v356_v35, 4 }
  0x4f   : > { %635 = vmatprep.subr.bf16.mxu0 %v1481_v2  ;;  %1122 = vmatmul.mubr.msk.bf16.vlgmr.msra.gmra.mrb[0].mxu1 %vm454_vm0, %v400_v52 }
  0x50   : > { %677 = vmatpush1.bf16.msra.mxu1 %v1475_v56  ;;  %708 = vmatprep.mubr.bf16.mxu1 %v1325_v17  ;;  %v358_v56 = vadd.f32 %v357_v36, %v356_v35  ;;  %v367_v17 = vadd.f32 %v366_v58, %v1487_v11  ;;  %v754_v35 = vadd.s32 128, %v753_v21 }
  0x51   : > { %678 = vmatprep.subr.bf16.mxu1 %v1483_v6 }
  0x52   : > { %636 = vmatpush1.bf16.msra.mxu0 %v410_v29  ;;  %v359_v63 = vrot.slane %v358_v56, 2  ;;  %v368_v0 = vrot.slane %v367_v17, 2  ;;  %v755_v29 = vadd.s32 256, %v753_v21  ;;  %v1548_v24 = vadd.s32 %v757_v31, %v754_v35 }
  0x54   : > { %679 = vmatpush1.bf16.msra.mxu1 %v412_v42  ;;  %v360_v2 = vadd.f32 %v359_v63, %v358_v56  ;;  %v369_v4 = vadd.f32 %v368_v0, %v367_v17  ;;  %v756_v42 = vadd.s32 384, %v753_v21  ;;  %v1542_v51 = vadd.s32 %v757_v31, %v755_v29 }
  0x55   : > { %vm915_vm3 = vcmp.lt.s32.totalorder %v1548_v24, 1000 }
  0x56   : > { %v361_v6 = vrot.slane %v360_v2, 1  ;;  %v370_v8 = vrot.slane %v369_v4, 1  ;;  %v1556_v58 = vadd.s32 %v757_v31, %v756_v42  ;;  %vm916_vm2 = vcmp.lt.s32.totalorder %v1542_v51, 1000 }
  0x58   : > { %v362_v10 = vadd.f32 %v361_v6, %v360_v2  ;;  %v371_v13 = vadd.f32 %v370_v8, %v369_v4  ;;  %vm917_vm4 = vcmp.lt.s32.totalorder %v1556_v58, 1000 }
  0x59   : > { %1123 = vmatmul.mubr.msk.bf16.vlgmr.msra.gmra.mrb[0].mxu0 %vm454_vm0, %v405_v30 }
  0x5a   : > { %v390_v11 = vmax.f32 %v362_v10, 1e-30  ;;  %v391_v16 = vmax.f32 %v371_v13, 1e-30 }
  0x5b   : > { %1124 = vmatmul.mubr.msk.bf16.vlgmr.msra.gmra.mrb[0].mxu1 %vm454_vm0, %v405_v30 }
  0x5c   : > { %1221 = vrsqrt.f32 %v390_v11 }
  0x5d   : > { %1223 = vrsqrt.f32 %v391_v16 }
  0x5e   : > { %1225 = vrsqrt.f32 %v392_v18 }
  0x5f   : > { %1227 = vrsqrt.f32 %v393_v19 }
  0x66   : > { %v1222_v22 = vpop.eup %1221 }
  0x67   : > { %v1224_v23 = vpop.eup %1223 }
  0x68   : > { %v1226_v26 = vpop.eup %1225 }
  0x69   : > { %v1228_v32 = vpop.eup %1227 }
  0xa6   : > { %v1614_v11 = vpop.permute.xlu0 %765 }
  0xa7   : > { %vm770_vm11 = vcmp.eq.s32.totalorder %v1536_v46, %v1614_v11  ;;  %vm771_vm14 = vcmp.eq.s32.totalorder %v1548_v24, %v1614_v11  ;;  %vm773_vm15 = vcmp.eq.s32.totalorder %v1556_v58, %v1614_v11 }
 0x12c   : > { %v667_v25 = vpop.f32.mrb[0].mxu0 }
 0x12d   : > { %v727_v27 = vmul.f32 %v1222_v22, %v667_v25  ;;  %v669_v28 = vpop.f32.mrb[1].mxu0 }
 0x12e   : > { %v728_v33 = vmul.f32 %v1224_v23, %v669_v28  ;;  %v671_v34 = vpop.f32.mrb[2].mxu0  ;;  %v710_v38 = vpop.f32.mrb[0].mxu1 }
 0x12f   : > { %v1532_v37 = vclamps-f32 %v727_v27, 0.999  ;;  %v731_v39 = vmul.f32 %v1222_v22, %v671_v34  ;;  %v673_v41 = vpop.f32.mrb[3].mxu0  ;;  %v729_v43 = vmul.f32 %v1226_v26, %v710_v38  ;;  %v712_v45 = vpop.f32.mrb[1].mxu1 }
 0x130   : > { %v1534_v44 = vclamps-f32 %v728_v33, 0.999  ;;  %v732_v40 = vmul.f32 %v1224_v23, %v673_v41  ;;  %v730_v48 = vmul.f32 %v1228_v32, %v712_v45  ;;  %v714_v50 = vpop.f32.mrb[2].mxu1 }
 0x131   : > { %v778_v47 = vmul.f32 %v1532_v37, %v1532_v37  ;;  %v1540_v49 = vclamps-f32 %v731_v39, 0.999  ;;  %v1544_v52 = vclamps-f32 %v729_v43, 0.999  ;;  %v733_v54 = vmul.f32 %v1226_v26, %v714_v50  ;;  %v716_v55 = vpop.f32.mrb[3].mxu1 }
 0x132   : > { %v779_v53 = vmul.f32 %v1534_v44, %v1534_v44  ;;  %v1552_v30 = vclamps-f32 %v730_v48, 0.999  ;;  %v1554_v36 = vclamps-f32 %v732_v40, 0.999  ;;  %v734_v2 = vmul.f32 %v1228_v32, %v716_v55 }
 0x133   : > { %v1550_v57 = vsub.f32 1.0, %v778_v47  ;;  %v780_v59 = vmul.f32 %v1544_v52, %v1544_v52  ;;  %v782_v56 = vmul.f32 %v1540_v49, %v1540_v49  ;;  %v1564_v17 = vclamps-f32 %v733_v54, 0.999 }
 0x134   : > { %v1560_v60 = vsub.f32 1.0, %v779_v53  ;;  %v781_v61 = vmul.f32 %v1552_v30, %v1552_v30  ;;  %v783_v1 = vmul.f32 %v1554_v36, %v1554_v36  ;;  %v1582_v3 = vmul.f32 0.87758255, %v1532_v37 }
 0x135   : > { %1229 = vrsqrt.f32 %v1550_v57  ;;  %v1570_v62 = vsub.f32 1.0, %v780_v59  ;;  %v784_v63 = vmul.f32 %v1564_v17, %v1564_v17  ;;  %v1585_v4 = vsub.f32 1.0, %v782_v56  ;;  %v1709_v59 = vpop.permute.xlu0 %768 }
 0x136   : > { %1231 = vrsqrt.f32 %v1560_v60  ;;  %v1576_v0 = vsub.f32 1.0, %v781_v61  ;;  %v1589_v5 = vmul.f32 0.87758255, %v1544_v52  ;;  %v1592_v6 = vmul.f32 0.87758255, %v1534_v44 }
 0x137   : > { %1233 = vrsqrt.f32 %v1570_v62  ;;  %v1595_v7 = vclamps-f32 %v734_v2, 0.999  ;;  %v1598_v8 = vmul.f32 0.87758255, %v1552_v30  ;;  %v1600_v9 = vsub.f32 1.0, %v784_v63 }
 0x138   : > { %1235 = vrsqrt.f32 %v1576_v0  ;;  %vm796_vm5 = vcmp.eq.f32.partialorder %v1550_v57, inf  ;;  %vm798_vm6 = vcmp.eq.f32.partialorder %v1550_v57, 0.0  ;;  %v1604_v10 = vsub.f32 1.0, %v783_v1 }
 0x139   : > { %v785_v12 = vmul.f32 %v1595_v7, %v1595_v7  ;;  %v799_v13 = vand.u32 2147483648, %v1550_v57  ;;  %vm803_vm7 = vcmp.eq.f32.partialorder %v1560_v60, inf  ;;  %vm805_vm8 = vcmp.eq.f32.partialorder %v1560_v60, 0.0 }
 0x13a   : > { %v806_v14 = vand.u32 2147483648, %v1560_v60  ;;  %vm810_vm9 = vcmp.eq.f32.partialorder %v1570_v62, inf  ;;  %1237 = vrsqrt.f32 %v1585_v4  ;;  %vm812_vm10 = vcmp.eq.f32.partialorder %v1570_v62, 0.0 }
 0x13b   : > { %v813_v15 = vand.u32 2147483648, %v1570_v62  ;;  %v1621_v16 = vsel %vm914_vm1, %v1532_v37, -inf  ;;  %v1626_v18 = vsel %vm915_vm3, %v1534_v44, -inf  ;;  %v1633_v19 = vsel %vm916_vm2, %v1544_v52, -inf }
 0x13c   : > { %v1638_v20 = vsel %vm917_vm4, %v1552_v30, -inf  ;;  %v1643_v21 = vsel %vm914_vm1, %v1540_v49, -inf  ;;  %v1648_v22 = vsel %vm915_vm3, %v1554_v36, -inf  ;;  %v1650_v25 = vsub.f32 1.0, %v785_v12 }
 0x13d   : > { %vm817_vm12 = vcmp.eq.f32.partialorder %v1576_v0, inf  ;;  %v1656_v26 = vsel %vm916_vm2, %v1564_v17, -inf  ;;  %v1661_v27 = vsel %vm917_vm4, %v1595_v7, -inf  ;;  %vm819_vm13 = vcmp.eq.f32.partialorder %v1576_v0, 0.0 }
 0x13e   : > { %v820_v31 = vand.u32 2147483648, %v1576_v0  ;;  %1239 = vrsqrt.f32 %v1604_v10  ;;  %vm874_vm0 = vcmp.lt.f32.partialorder %v1532_v37, -0.8771027  ;;  %vm875_vm1 = vcmp.lt.f32.partialorder %v1534_v44, -0.8771027 }
 0x13f   : > { %v1230_v23 = vpop.eup %1229  ;;  %1241 = vrsqrt.f32 %v1600_v9  ;;  %vm876_vm2 = vcmp.lt.f32.partialorder %v1544_v52, -0.8771027  ;;  %vm824_vm3 = vcmp.eq.f32.partialorder %v1585_v4, inf  ;;  %vm826_vm4 = vcmp.eq.f32.partialorder %v1585_v4, 0.0 }
 0x140   : > { %v1232_v28 = vpop.eup %1231  ;;  %v795_v29 = vmul.f32 %v1230_v23, %v1550_v57  ;;  %v827_v35 = vand.u32 2147483648, %v1585_v4  ;;  %1243 = vrsqrt.f32 %v1650_v25  ;;  %v834_v50 = vand.u32 2147483648, %v1604_v10 }
 0x141   : > { %v802_v32 = vmul.f32 %v1232_v28, %v1560_v60  ;;  %v1234_v33 = vpop.eup %1233 }
 0x142   : > { %v797_v34 = vsel %vm796_vm5, %v1550_v57, %v795_v29  ;;  %v1236_v38 = vpop.eup %1235  ;;  %v809_v42 = vmul.f32 %v1234_v33, %v1570_v62  ;;  %vm838_vm5 = vcmp.eq.f32.partialorder %v1600_v9, inf  ;;  %v854_v33 = vmul.f32 0.87758255, %v1540_v49 }
 0x143   : > { %v800_v39 = vsel %vm798_vm6, %v799_v13, %v797_v34  ;;  %v804_v41 = vsel %vm803_vm7, %v1560_v60, %v802_v32  ;;  %v816_v45 = vmul.f32 %v1236_v38, %v1576_v0  ;;  %vm831_vm6 = vcmp.eq.f32.partialorder %v1604_v10, inf }
 0x144   : > { %v807_v43 = vsel %vm805_vm8, %v806_v14, %v804_v41  ;;  %v858_v40 = vmul.f32 0.47942555, %v800_v39  ;;  %v811_v47 = vsel %vm810_vm9, %v1570_v62, %v809_v42  ;;  %vm833_vm7 = vcmp.eq.f32.partialorder %v1604_v10, 0.0  ;;  %v1238_v53 = vpop.eup %1237 }
 0x145   : > { %v859_v48 = vmul.f32 0.47942555, %v807_v43  ;;  %v814_v54 = vsel %vm812_vm10, %v813_v15, %v811_v47  ;;  %v818_v55 = vsel %vm817_vm12, %v1576_v0, %v816_v45  ;;  %vm840_vm8 = vcmp.eq.f32.partialorder %v1600_v9, 0.0 }
 0x146   : > { %v866_v57 = vsub.f32 %v1582_v3, %v858_v40  ;;  %v841_v60 = vand.u32 2147483648, %v1600_v9  ;;  %v821_v56 = vsel %vm819_vm13, %v820_v31, %v818_v55  ;;  %v860_v61 = vmul.f32 0.47942555, %v814_v54 }
 0x147   : > { %v867_v63 = vsub.f32 %v1592_v6, %v859_v48  ;;  %v823_v62 = vmul.f32 %v1238_v53, %v1585_v4  ;;  %v861_v1 = vmul.f32 0.47942555, %v821_v56  ;;  %vm845_vm9 = vcmp.eq.f32.partialorder %v1650_v25, inf }
 0x148   : > { %v882_v2 = vsel %vm874_vm0, -0.9999995, %v866_v57  ;;  %vm847_vm10 = vcmp.eq.f32.partialorder %v1650_v25, 0.0  ;;  %v868_v3 = vsub.f32 %v1589_v5, %v860_v61  ;;  %vm774_vm12 = vcmp.eq.s32.totalorder %v1536_v46, %v1709_v59  ;;  %v1240_v13 = vpop.eup %1239 }
 0x149   : > { %v883_v12 = vsel %vm875_vm1, -0.9999995, %v867_v63  ;;  %v890_v0 = vsel %vm770_vm11, %v882_v2, %v1532_v37  ;;  %v825_v6 = vsel %vm824_vm3, %v1585_v4, %v823_v62  ;;  %v869_v14 = vsub.f32 %v1598_v8, %v861_v1  ;;  %v1242_v37 = vpop.eup %1241 }
 0x14a   : > { %v891_v5 = vsel %vm771_vm14, %v883_v12, %v1534_v44  ;;  %v898_v15 = vmul.f32 64.0, %v890_v0  ;;  %v828_v23 = vsel %vm826_vm4, %v827_v35, %v825_v6  ;;  %v884_v28 = vsel %vm876_vm2, -0.9999995, %v868_v3  ;;  %v1244_v34 = vpop.eup %1243 }
 0x14b   : > { %v899_v29 = vmul.f32 64.0, %v891_v5  ;;  %v830_v31 = vmul.f32 %v1240_v13, %v1604_v10  ;;  %v848_v32 = vand.u32 2147483648, %v1650_v25  ;;  %vm1895_vm11 = vcmp.lt.f32.partialorder %v1552_v30, -0.8771027 }
 0x14c   : > { %v885_v8 = vsel %vm1895_vm11, -0.9999995, %v869_v14  ;;  %vm1896_vm13 = vcmp.eq.s32.totalorder %v1542_v51, %v1614_v11  ;;  %906 = vst [vmem:[%s1752_s7] sm:$0xff] %v898_v15  ;;  %v837_v4 = vmul.f32 %v1242_v37, %v1600_v9  ;;  %v862_v39 = vmul.f32 0.47942555, %v828_v23 }
 0x14d   : > { %v892_v44 = vsel %vm1896_vm13, %v884_v28, %v1544_v52  ;;  %v893_v35 = vsel %vm773_vm15, %v885_v8, %v1552_v30  ;;  %907 = vst [vmem:[%s1752_s7 + $0x8] sm:$0xff] %v899_v29  ;;  %v832_v52 = vsel %vm831_vm6, %v1604_v10, %v830_v31  ;;  %v844_v45 = vmul.f32 %v1244_v34, %v1650_v25 }
 0x14e   : > { %v900_v38 = vmul.f32 64.0, %v892_v44  ;;  %v901_v41 = vmul.f32 64.0, %v893_v35  ;;  %v835_v42 = vsel %vm833_vm7, %v834_v50, %v832_v52  ;;  %v839_v43 = vsel %vm838_vm5, %v1600_v9, %v837_v4 }
 0x14f   : > { %v842_v30 = vsel %vm840_vm8, %v841_v60, %v839_v43  ;;  %v855_v11 = vmul.f32 0.87758255, %v1554_v36  ;;  %v863_v40 = vmul.f32 0.47942555, %v835_v42  ;;  %v870_v47 = vsub.f32 %v854_v33, %v862_v39 }
 0x150   : > { %908 = vst [vmem:[%s1752_s7 + $0x10] sm:$0xff] %v900_v38  ;;  %909 = vst [vmem:[%s1752_s7 + $0x18] sm:$0xff] %v901_v41  ;;  %v846_v10 = vsel %vm845_vm9, %v1650_v25, %v844_v45  ;;  %v856_v48 = vmul.f32 0.87758255, %v1564_v17  ;;  %v864_v50 = vmul.f32 0.47942555, %v842_v30  ;;  %vm775_vm0 = vcmp.eq.s32.totalorder %v1548_v24, %v1709_v59 }
 0x151   : > { %vm878_vm14 = vcmp.lt.f32.partialorder %v1540_v49, -0.8771027  ;;  %v849_v53 = vsel %vm847_vm10, %v848_v32, %v846_v10  ;;  %v857_v9 = vmul.f32 0.87758255, %v1595_v7  ;;  %v871_v54 = vsub.f32 %v855_v11, %v863_v40 }
 0x152   : > { %v886_v55 = vsel %vm878_vm14, -0.9999995, %v870_v47  ;;  %v865_v57 = vmul.f32 0.47942555, %v849_v53  ;;  %v872_v60 = vsub.f32 %v856_v48, %v864_v50  ;;  %vm879_vm15 = vcmp.lt.f32.partialorder %v1554_v36, -0.8771027 }
 0x153   : > { %v894_v56 = vsel %vm774_vm12, %v886_v55, %v1540_v49  ;;  %vm880_vm1 = vcmp.lt.f32.partialorder %v1564_v17, -0.8771027  ;;  %v887_v25 = vsel %vm879_vm15, -0.9999995, %v871_v54  ;;  %vm776_vm2 = vcmp.eq.s32.totalorder %v1542_v51, %v1709_v59 }
 0x154   : > { %v902_v61 = vmul.f32 64.0, %v894_v56  ;;  %v873_v63 = vsub.f32 %v857_v9, %v865_v57  ;;  %v888_v62 = vsel %vm880_vm1, -0.9999995, %v872_v60  ;;  %v895_v1 = vsel %vm775_vm0, %v887_v25, %v1554_v36  ;;  %929 = sbr.rel (%p1134_p0) target bundleno = 347 (0x15b), region = 59 }
 0x155   : > { %vm881_vm3 = vcmp.lt.f32.partialorder %v1595_v7, -0.8771027  ;;  %v896_v46 = vsel %vm776_vm2, %v888_v62, %v1564_v17  ;;  %v903_v49 = vmul.f32 64.0, %v895_v1  ;;  %vm777_vm4 = vcmp.eq.s32.totalorder %v1556_v58, %v1709_v59 }
 0x156   : > { %910 = vst [vmem:[%s1752_s7 + $0x20] sm:$0xff] %v902_v61  ;;  %v889_v24 = vsel %vm881_vm3, -0.9999995, %v873_v63  ;;  %v904_v2 = vmul.f32 64.0, %v896_v46  ;;  %vm930_vm5 = vcmask (!%p1134_p0), 7168   ;;  %v1326_v51 = vmov (!%p1134_p0), -inf  }
 0x157   : > { %v897_v3 = vsel %vm777_vm4, %v889_v24, %v1595_v7  ;;  %911 = vst [vmem:[%s1752_s7 + $0x28] sm:$0xff] %v903_v49  ;;  %931 = vst.msk [vmem:[%s1892_s4] sm:$0xff] (!%p1134_p0), %vm930_vm5, %v1326_v51 }
 0x158   : > { %v905_v12 = vmul.f32 64.0, %v897_v3  ;;  %912 = vst [vmem:[%s1752_s7 + $0x30] sm:$0xff] %v904_v2  ;;  %932 = vst.msk [vmem:[%s1892_s4 + $0x8] sm:$0xff] (!%p1134_p0), %vm930_vm5, %v1326_v51 }
 0x15a   : > { %913 = vst [vmem:[%s1752_s7 + $0x38] sm:$0xff] %v905_v12 }
 0x15b PF: > { %v935_v36 = vmax.f32 %v1621_v16, %v1633_v19  ;;  %v936_v58 = vmax.f32 %v1626_v18, %v1638_v20  ;;  %v940_v17 = vmax.f32 %v1643_v21, %v1656_v26  ;;  %v941_v7 = vmax.f32 %v1648_v22, %v1661_v27  ;;  %s972_s13 = sshll.u32 %s1752_s7, 4  ;;  %s1825_s22 = scalar_lea.hbm %s1891_s3, %s1133_s5  ;;  %s1827_s13 = int_to_ptr.vmem [resolvable:$true] %s972_s13 }
 0x15c   : > { %s951_s24 = scalar_lea.sflag [#allocation4], %s1439_s10  ;;  %s1245_s26 = scalar_lea.vmem %s1827_s13, 1024 }
 0x15d   : > { %v937_v59 = vmax.f32 %v935_v36, %v936_v58  ;;  %v942_v0 = vmax.f32 %v940_v17, %v941_v7  ;;  %p1246_p1 = scmp.ne.s32.totalorder %s1827_s13, %s1245_s26  ;;  %s1327_s29 = smov [#allocation3]  }
 0x15e   : > { %s1249_s30 = sshll.u32 %s1327_s29, 4  ;;  %s1250_s30 = int_to_ptr.vmem [resolvable:$false] %s1249_s30 }
 0x15f   : > { %938 = vmax.xlane.f32.xlu0 %v937_v59  ;;  %p1247_p2 = pnand %p1246_p1, %p1395_p5  ;;  %s1251_s18 = scalar_lea.vmem %s1250_s30, 2048 }
 0x160   : > { %p1252_p4 = scmp.lt.s32.totalorder %s1827_s13, %s1250_s30  ;;  %p1253_p6 = scmp.lt.s32.totalorder %s1251_s18, %s1245_s26 }
 0x161   : > { %p1248_p3 = pneg %p1247_p2 }
 0x162   : > { %p1254_p7 = por %p1253_p6, %p1252_p4 }
 0x163   : > { %943 = vmax.xlane.f32.xlu0 %v942_v0 }
 0x164   : > { %p1255_p8 = pnand %p1254_p7, %p1248_p3 }
 0x166   : > { %1258 = shalt.err (!%p1255_p8)
}
 0x167   : > { %s1259_s5 = scalar_lea.hbm %s1825_s22, 1024  ;;  %s1263_s8 = scalar_lea.hbm %s1891_s3, 2048 }
 0x168   : > { %p1260_p11 = scmp.ne.s32.totalorder %s1825_s22, %s1259_s5  ;;  %p1264_p0 = scmp.lt.u32.totalorder %s1825_s22, %s1891_s3 }
 0x169   : > { %p1265_p1 = scmp.lt.u32.totalorder %s1263_s8, %s1259_s5  ;;  %p1267_p3 = scmp.lt.u32.totalorder %s1259_s5, %s1825_s22 }
 0x16a   : > { %p1261_p12 = pnand %p1260_p11, %p1395_p5 }
 0x16b   : > { %p1266_p2 = por %p1265_p1, %p1264_p0 }
 0x16c   : > { %p1262_p13 = pneg %p1261_p12 }
 0x16d   : > { %p1268_p4 = por %p1267_p3, %p1266_p2 }
 0x16f   : > { %p1269_p6 = pnand %p1268_p4, %p1262_p13 }
 0x171   : > { %1272 = shalt.err (!%p1269_p6)
}
 0x172   : > { %s1328_s12 = smov 512   ;;  %s1329_s14 = smov 1024   ;;  %v933_v16 = vld [vmem:[%s1892_s4] sm:$0xff]  ;;  %vm947_vm6 = vcmask 7168   ;;  %v934_v20 = vld [vmem:[%s1892_s4 + $0x8] sm:$0xff] }
 0x173   : > { %s1330_s21 = smov 32  }
 0x174   : > { %1160 = dma.vmem_to_hbm [thread:$0]  (%p1395_p5), %s1827_s13, 1024, %s1825_s22, %s951_s24, %s1328_s12, %s1329_s14, %s1330_s21  }
 0x1ec   : > { %v939_v18 = vpop.xlane.xlu0 %938 }
 0x1ed   : > { %v945_v19 = vmax.f32 %v933_v16, %v939_v18 }
 0x1ef   : > { %948 = vst.msk [vmem:[%s1892_s4] sm:$0xff] %vm947_vm6, %v945_v19 }
 0x1f0   : > { %v944_v21 = vpop.xlane.xlu0 %943 }
 0x1f1   : > { %v946_v22 = vmax.f32 %v934_v20, %v944_v21 }
 0x1f3   : > { %949 = vst.msk [vmem:[%s1892_s4 + $0x8] sm:$0xff] %vm947_vm6, %v946_v22 }
 0x1f4 PF: > { %s999_s13 = sand.u32 1, %s1303_s15   ;;  %p1163_p5 = pnand %p1112_p10, %p1406_p9 }
 0x1f5   : > { %s1000_s22 = scalar_lea.sflag [#allocation4], %s999_s13 }
 0x1f6   : > { %1298 = dma.done.wait (!%p1163_p5), %s1000_s22, 1024  }
 0x1f7   : > { %1300 = vsyncadd (!%p1163_p5), %s1000_s22, 4294966272  ;;  %s18_s20 = sadd.s32 1, %s1323_s20   ;;  %s1897_s15 = smov %s1307_s16 }
 0x1f8   : > { %p15_p7 = scmp.ge.s32.totalorder %s18_s20, 4   ;;  %s1898_s16 = smov %s1311_s17 }
 0x1f9   : > { %s1899_s17 = smov %s1404_s27  ;;  %s1900_s18 = smov %s1319_s19 }
 0x1fa   : > { %s1901_s19 = smov %s1903_s23  ;;  %17 = sbr.rel (!%p15_p7) target bundleno = 4 (0x4), region = 117 }
 0x201   :  { %1005 = vsyncpa [#allocation4], 1 }
 0x202   :  { %1007 = vsyncpa [#allocation4 + $0x1], 1 }

</bundles_post_ra>
